<compile_context>
chip_gen: v7x
topology: tpu7x:2x2x1
jax: 0.10.0
libtpu: 0.0.40
codegen_flags: <defaults>
</compile_context>

<pallas_src>
import functools

import jax
import jax.numpy as jnp
from jax import lax
from jax.experimental import pallas as pl
from jax.experimental.pallas import tpu as pltpu


def _round_up(x: int, m: int) -> int:
    return ((x + m - 1) // m) * m


def _make_supcon_kernel(batch_real: int):
    """Kernel closure over the real (unpadded) batch size."""

    def kernel(anchor_ref, contrast_ref, lab_col_ref, lab_row_ref, out_ref):
        tile = pl.program_id(0)
        TB = anchor_ref.shape[0]
        Bp = contrast_ref.shape[0]

        lhs = anchor_ref[...]        # (TB, Dp) bf16, pre-scaled by 1/temperature
        rhs = contrast_ref[...]      # (Bp, Dp) bf16

        # logits[i, j] = <f_i, f_j> / temperature  (MXU, f32 accumulate,
        # contraction over the feature dim -> no explicit transpose).
        logits = lax.dot_general(
            lhs, rhs, (((1,), (1,)), ((), ())),
            preferred_element_type=jnp.float32)                     # (TB, Bp)

        # Fused boolean masks: drop self-contrast diagonal and padded columns.
        row_ids = tile * TB + lax.broadcasted_iota(jnp.int32, (TB, Bp), 0)
        col_ids = lax.broadcasted_iota(jnp.int32, (TB, Bp), 1)
        col_valid = col_ids < batch_real
        logits_mask = jnp.logical_and(row_ids != col_ids, col_valid)  # (TB, Bp)
        pos_mask = jnp.logical_and(
            lab_col_ref[...] == lab_row_ref[...], logits_mask)        # (TB, Bp)

        # Softmax denominator over valid, non-self columns (no max-subtraction,
        # per the PyTorch reference; assumes normalized embeddings).
        exp_logits = jnp.where(logits_mask, jnp.exp(logits), 0.0)
        denom = jnp.sum(exp_logits, axis=1, keepdims=True) + 1e-8     # (TB, 1)
        log_prob = logits - jnp.log(denom)                            # (TB, Bp)

        pos_f = pos_mask.astype(jnp.float32)
        pos_sum = jnp.sum(pos_f * log_prob, axis=1, keepdims=True)    # (TB, 1)
        pos_cnt = jnp.maximum(jnp.sum(pos_f, axis=1, keepdims=True), 1.0)
        mean_log_prob_pos = pos_sum / pos_cnt                         # (TB, 1)

        # Zero padded anchor rows so the host-side sum/B is exact.
        row_valid = (tile * TB
                     + lax.broadcasted_iota(jnp.int32, (TB, 1), 0)) < batch_real
        out_ref[...] = jnp.where(row_valid, mean_log_prob_pos, 0.0)

    return kernel


def _pick_row_tile(b_pad: int, target: int) -> int:
    tb = min(target, b_pad)
    while b_pad % tb != 0:   # b_pad is a multiple of 128, so this lands on 128
        tb //= 2
    return max(tb, 8)


@functools.partial(jax.jit, static_argnames=("temperature", "block_rows"))
def supcon_loss_pallas(features, labels, temperature: float = 0.07,
                       block_rows: int = 256):
    """Supervised contrastive loss (SupConLoss.forward) via a Pallas TPU kernel."""
    B, D = features.shape
    Bp = _round_up(B, 128)   # lane-dense (TB, Bp) intermediates
    Dp = _round_up(D, 128)   # full MXU contraction dim
    TB = _pick_row_tile(Bp, block_rows)
    num_tiles = Bp // TB

    feats_f32 = features.astype(jnp.float32)
    feat_pad = jnp.pad(feats_f32, ((0, Bp - B), (0, Dp - D)))
    inv_t = jnp.float32(1.0 / temperature)
    # Fold 1/temperature into the anchor operand (scale in f32, then bf16).
    anchors = (feat_pad * inv_t).astype(jnp.bfloat16)        # (Bp, Dp)
    contrast = feat_pad.astype(jnp.bfloat16)                 # (Bp, Dp)

    lab = labels.astype(jnp.int32).reshape(-1)
    lab_pad = jnp.pad(lab, ((0, Bp - B),), constant_values=-1)
    lab_col = lab_pad.reshape(Bp, 1)
    lab_row = lab_pad.reshape(1, Bp)

    # Rough VMEM budget (bf16 operand buffers + f32 (TB, Bp) intermediates),
    # with headroom, clamped below v7x's 64 MiB physical VMEM.
    vmem_est = (2 * TB * Dp * 2 + 2 * Bp * Dp * 2
                + 4 * TB * Bp * 4 + 4 * (TB + Bp) * 4)
    vmem_limit = min(64 * 1024 * 1024, max(16 * 1024 * 1024, 2 * vmem_est))

    cost = pl.CostEstimate(
        flops=2 * Bp * Bp * Dp,
        transcendentals=Bp * Bp + Bp,
        bytes_accessed=2 * Bp * Dp * 2 + 2 * Bp * 4 + Bp * 4)

    partial = pl.pallas_call(
        _make_supcon_kernel(B),
        out_shape=jax.ShapeDtypeStruct((Bp, 1), jnp.float32),
        grid=(num_tiles,),
        in_specs=[
            pl.BlockSpec((TB, Dp), lambda i: (i, 0)),   # anchor rows (streamed)
            pl.BlockSpec((Bp, Dp), lambda i: (0, 0)),   # contrast block (resident)
            pl.BlockSpec((TB, 1), lambda i: (i, 0)),    # anchor labels
            pl.BlockSpec((1, Bp), lambda i: (0, 0)),    # contrast labels
        ],
        out_specs=pl.BlockSpec((TB, 1), lambda i: (i, 0)),
        compiler_params=pltpu.CompilerParams(
            dimension_semantics=("parallel",),
            vmem_limit_bytes=vmem_limit),
        cost_estimate=cost,
    )(anchors, contrast, lab_col, lab_row)

    # Padded rows were zeroed in-kernel; divide by the real batch size.
    return -(jnp.sum(partial) / jnp.float32(B))


def supcon_loss_ref(features, labels, temperature=0.07):
    """Pure-JAX f32 reference mirroring the PyTorch module exactly."""
    B = features.shape[0]
    features = features.astype(jnp.float32)
    labels = labels.reshape(-1, 1)
    mask = (labels == labels.T).astype(jnp.float32)
    logits = jnp.matmul(features, features.T) / temperature
    logits_mask = jnp.ones_like(mask) - jnp.eye(B, dtype=jnp.float32)
    mask = mask * logits_mask
    exp_logits = jnp.exp(logits) * logits_mask
    log_prob = logits - jnp.log(exp_logits.sum(1, keepdims=True) + 1e-8)
    mean_log_prob_pos = (mask * log_prob).sum(1) / jnp.maximum(mask.sum(1), 1.0)
    return -mean_log_prob_pos.mean()


if __name__ == "__main__":
    key = jax.random.PRNGKey(0)
    kf, kl = jax.random.split(key)

    B, D = 8, 32
    features = jax.random.normal(kf, (B, D), dtype=jnp.float32)
    # SupCon features are L2-normalized embeddings; keeps exp() finite.
    features = features / jnp.linalg.norm(features, axis=1, keepdims=True)
    labels = jax.random.randint(kl, (B,), 0, 4, dtype=jnp.int32)

    loss = jax.block_until_ready(supcon_loss_pallas(features, labels))
    loss_ref = jax.block_until_ready(supcon_loss_ref(features, labels))

    assert jnp.isfinite(loss), loss
    # bf16 MXU operands -> looser tolerance vs the f32 reference.
    assert jnp.allclose(loss, loss_ref, rtol=2e-2, atol=2e-2), (loss, loss_ref)
    print("KERNEL_OK")
</pallas_src>

<mosaic_0001>
module attributes {stable_mosaic.version = 11 : i64} {
  func.func @kernel(%arg0: i32, %arg1: memref<128x128xbf16, #tpu.memory_space<vmem>>, %arg2: memref<128x128xbf16, #tpu.memory_space<vmem>>, %arg3: memref<128x1xi32, #tpu.memory_space<vmem>>, %arg4: memref<1x128xi32, #tpu.memory_space<vmem>>, %arg5: memref<128x1xf32, #tpu.memory_space<vmem>>) attributes {dimension_semantics = [#tpu.dimension_semantics<parallel>], iteration_bounds = array<i64: 1>, scalar_prefetch = 0 : i64, scratch_operands = 0 : i64, tpu.core_type = #tpu.core_type<tc>, window_params = [{transform_indices = @transform_0, window_bounds = array<i64: 128, 128>}, {pipeline_mode = #tpu.pipeline_mode<synchronous>, transform_indices = @transform_1, window_bounds = array<i64: 128, 128>}, {transform_indices = @transform_2, window_bounds = array<i64: 128, 1>}, {pipeline_mode = #tpu.pipeline_mode<synchronous>, transform_indices = @transform_3, window_bounds = array<i64: 1, 128>}, {transform_indices = @transform_4, window_bounds = array<i64: 128, 1>}]} {
    %c0 = arith.constant 0 : index
    %c0_0 = arith.constant 0 : index
    %0 = vector.load %arg1[%c0, %c0_0] : memref<128x128xbf16, #tpu.memory_space<vmem>>, vector<128x128xbf16>
    %c0_1 = arith.constant 0 : index
    %c0_2 = arith.constant 0 : index
    %1 = vector.load %arg2[%c0_1, %c0_2] : memref<128x128xbf16, #tpu.memory_space<vmem>>, vector<128x128xbf16>
    %cst = arith.constant dense<0.000000e+00> : vector<128x128xf32>
    %2 = tpu.matmul %0, %1, %cst {dimension_numbers = #tpu.dot_dimension_numbers<[1], [1], [0], [0], [0, 0, 1, 0], [], []>} : vector<128x128xbf16>, vector<128x128xbf16>, vector<128x128xf32> -> vector<128x128xf32>
    %c128_i32 = arith.constant 128 : i32
    %3 = arith.muli %arg0, %c128_i32 : i32
    %4 = tpu.iota {dimensions = array<i32: 0>} : vector<128x128xi32>
    %5 = vector.broadcast %3 : i32 to vector<128x128xi32>
    %6 = arith.addi %5, %4 : vector<128x128xi32>
    %7 = tpu.iota {dimensions = array<i32: 1>} : vector<128x128xi32>
    %c8_i32 = arith.constant 8 : i32
    %8 = vector.broadcast %c8_i32 : i32 to vector<128x128xi32>
    %9 = arith.cmpi slt, %7, %8 : vector<128x128xi32>
    %10 = arith.cmpi ne, %6, %7 : vector<128x128xi32>
    %11 = arith.andi %10, %9 : vector<128x128xi1>
    %c0_3 = arith.constant 0 : index
    %c0_4 = arith.constant 0 : index
    %12 = vector.load %arg3[%c0_3, %c0_4] : memref<128x1xi32, #tpu.memory_space<vmem>>, vector<128x1xi32>
    %c0_5 = arith.constant 0 : index
    %c0_6 = arith.constant 0 : index
    %13 = vector.load %arg4[%c0_5, %c0_6] : memref<1x128xi32, #tpu.memory_space<vmem>>, vector<1x128xi32>
    %14 = vector.broadcast %12 : vector<128x1xi32> to vector<128x128xi32>
    %15 = vector.broadcast %13 : vector<1x128xi32> to vector<128x128xi32>
    %16 = arith.cmpi eq, %14, %15 : vector<128x128xi32>
    %17 = arith.andi %16, %11 : vector<128x128xi1>
    %18 = math.exp %2 : vector<128x128xf32>
    %cst_7 = arith.constant 0.000000e+00 : f32
    %19 = vector.broadcast %cst_7 : f32 to vector<128x128xf32>
    %20 = arith.select %11, %18, %19 : vector<128x128xi1>, vector<128x128xf32>
    %cst_8 = arith.constant dense<0.000000e+00> : vector<128xf32>
    %21 = vector.multi_reduction <add>, %20, %cst_8 [1] : vector<128x128xf32> to vector<128xf32>
    %22 = vector.shape_cast %21 : vector<128xf32> to vector<128x1xf32>
    %cst_9 = arith.constant 9.99999993E-9 : f32
    %23 = vector.broadcast %cst_9 : f32 to vector<128x1xf32>
    %24 = arith.addf %22, %23 : vector<128x1xf32>
    %25 = math.log %24 : vector<128x1xf32>
    %26 = vector.broadcast %25 : vector<128x1xf32> to vector<128x128xf32>
    %27 = arith.subf %2, %26 : vector<128x128xf32>
    %28 = arith.extui %17 : vector<128x128xi1> to vector<128x128xi32>
    %29 = arith.sitofp %28 : vector<128x128xi32> to vector<128x128xf32>
    %30 = arith.mulf %29, %27 : vector<128x128xf32>
    %cst_10 = arith.constant dense<0.000000e+00> : vector<128xf32>
    %31 = vector.multi_reduction <add>, %30, %cst_10 [1] : vector<128x128xf32> to vector<128xf32>
    %32 = vector.shape_cast %31 : vector<128xf32> to vector<128x1xf32>
    %cst_11 = arith.constant dense<0.000000e+00> : vector<128xf32>
    %33 = vector.multi_reduction <add>, %29, %cst_11 [1] : vector<128x128xf32> to vector<128xf32>
    %34 = vector.shape_cast %33 : vector<128xf32> to vector<128x1xf32>
    %cst_12 = arith.constant 1.000000e+00 : f32
    %35 = vector.broadcast %cst_12 : f32 to vector<128x1xf32>
    %36 = arith.maximumf %34, %35 : vector<128x1xf32>
    %37 = arith.divf %32, %36 : vector<128x1xf32>
    %c128_i32_13 = arith.constant 128 : i32
    %38 = arith.muli %arg0, %c128_i32_13 : i32
    %39 = tpu.iota {dimensions = array<i32: 0>} : vector<128x1xi32>
    %40 = vector.broadcast %38 : i32 to vector<128x1xi32>
    %41 = arith.addi %40, %39 : vector<128x1xi32>
    %c8_i32_14 = arith.constant 8 : i32
    %42 = vector.broadcast %c8_i32_14 : i32 to vector<128x1xi32>
    %43 = arith.cmpi slt, %41, %42 : vector<128x1xi32>
    %cst_15 = arith.constant 0.000000e+00 : f32
    %44 = vector.broadcast %cst_15 : f32 to vector<128x1xf32>
    %45 = arith.select %43, %37, %44 : vector<128x1xi1>, vector<128x1xf32>
    %c0_16 = arith.constant 0 : index
    %c0_17 = arith.constant 0 : index
    %46 = vector.load %arg5[%c0_16, %c0_17] : memref<128x1xf32, #tpu.memory_space<vmem>>, vector<128x1xf32>
    tpu.vector_store %arg5[%c0_16, %c0_17], %45 {strides = array<i32>} : memref<128x1xf32, #tpu.memory_space<vmem>>, vector<128x1xf32>,
    return
  }
  func.func @transform_0(%arg0: i32) -> (i32, i32) {
    %c0_i32 = arith.constant 0 : i32
    %c0_i32_0 = arith.constant 0 : i32
    return %arg0, %c0_i32 : i32, i32
  }
  func.func @transform_1(%arg0: i32) -> (i32, i32) {
    %c0_i32 = arith.constant 0 : i32
    %c0_i32_0 = arith.constant 0 : i32
    %c0_i32_1 = arith.constant 0 : i32
    return %c0_i32, %c0_i32_0 : i32, i32
  }
  func.func @transform_2(%arg0: i32) -> (i32, i32) {
    %c0_i32 = arith.constant 0 : i32
    %c0_i32_0 = arith.constant 0 : i32
    return %arg0, %c0_i32 : i32, i32
  }
  func.func @transform_3(%arg0: i32) -> (i32, i32) {
    %c0_i32 = arith.constant 0 : i32
    %c0_i32_0 = arith.constant 0 : i32
    %c0_i32_1 = arith.constant 0 : i32
    return %c0_i32, %c0_i32_0 : i32, i32
  }
  func.func @transform_4(%arg0: i32) -> (i32, i32) {
    %c0_i32 = arith.constant 0 : i32
    %c0_i32_0 = arith.constant 0 : i32
    return %arg0, %c0_i32 : i32, i32
  }
}

</mosaic_0001>

<bundles_post_ra>
// kernel: supcon_loss_pallas.1
= control target key start
LH: loop header
LB: loop body
LE: loop exit
PB: predicated region body
PF: predicated region fallthrough
CT: control target
= control target key end

     0   :  { %v893_v10 = vmov 0   ;;  %v244_v19 = vlaneseq  ;;  %v894_v45 = vmov 0.0   ;;  %vm750_vm5 = vcmask 7168   ;;  %s1046_s1 = inlined_call_operand.vmem [shape: bf16[128,128], index: 1, kind: input, shape index: {}]   ;;  %s1047_s0 = inlined_call_operand.vmem [shape: bf16[128,128], index: 0, kind: input, shape index: {}]   ;;  %s1048_s2 = inlined_call_operand.vmem [shape: s32[128,1], index: 2, kind: input, shape index: {}]   ;;  %s1049_s3 = inlined_call_operand.vmem [shape: s32[1,128], index: 3, kind: input, shape index: {}]   ;;  %s1050_s4 = inlined_call_operand.vmem [shape: f32[128,1], index: 4, kind: output, shape index: {}]  }
   0x1   :  { %v871_v0 = vld [vmem:[%s1046_s1] sm:$0xff]   ;;  %v872_v1 = vld [vmem:[%s1046_s1 + $0x8] sm:$0xff]   ;;  %v873_v2 = vld [vmem:[%s1046_s1 + $0x10] sm:$0xff]   ;;  %870 = vset.pattern.permute.xlu0 %v893_v10  ;;  %752 = vst.msk [vmem:[%s1050_s4 + $0x8] sm:$0xff] %vm750_vm5, %v894_v45 }
   0x2   :  { %820 = vmatprep.subr.bf16.mxu0 %v871_v0  ;;  %852 = vmatprep.subr.bf16.mxu1 %v871_v0  ;;  %v879_v3 = vld [vmem:[%s1047_s0] sm:$0xff]   ;;  %v874_v4 = vld [vmem:[%s1046_s1 + $0x18] sm:$0xff]   ;;  %v876_v6 = vld [vmem:[%s1046_s1 + $0x28] sm:$0xff]   ;;  %v245_v23 = vshrl.u32 %v244_v19, 7  ;;  %v279_v24 = vand.u32 127, %v244_v19  ;;  %753 = vst.msk [vmem:[%s1050_s4 + $0x10] sm:$0xff] %vm750_vm5, %v894_v45 }
   0x3   :  { %821 = vmatpush3.bf16.xpose.msra.mxu0 %v871_v0  ;;  %860 = vmatpush3.bf16.xpose.msra.mxu1 %v871_v0  ;;  %v875_v5 = vld [vmem:[%s1046_s1 + $0x20] sm:$0xff]   ;;  %v877_v7 = vld [vmem:[%s1046_s1 + $0x30] sm:$0xff]   ;;  %v878_v8 = vld [vmem:[%s1046_s1 + $0x38] sm:$0xff]   ;;  %754 = vst.msk [vmem:[%s1050_s4 + $0x18] sm:$0xff] %vm750_vm5, %v894_v45 }
   0x4   :  { %822 = vmatprep.subr.bf16.mxu0 %v872_v1  ;;  %853 = vmatprep.subr.bf16.mxu1 %v872_v1  ;;  %v880_v9 = vld [vmem:[%s1047_s0 + $0x8] sm:$0xff]   ;;  %v881_v11 = vld [vmem:[%s1047_s0 + $0x20] sm:$0xff]   ;;  %v883_v13 = vld [vmem:[%s1047_s0 + $0x10] sm:$0xff]   ;;  %vm280_vm0 = vcmp.lt.s32.totalorder %v279_v24, 8  ;;  %vm281_vm1 = vcmp.ne.s32.totalorder %v245_v23, %v279_v24  ;;  %755 = vst.msk [vmem:[%s1050_s4 + $0x20] sm:$0xff] %vm750_vm5, %v894_v45 }
   0x5   :  { %836 = vmatprep.mubr.bf16.mxu0 %v879_v3  ;;  %v882_v12 = vld [vmem:[%s1047_s0 + $0x28] sm:$0xff]   ;;  %v884_v14 = vld [vmem:[%s1047_s0 + $0x30] sm:$0xff]   ;;  %v885_v15 = vld [vmem:[%s1047_s0 + $0x18] sm:$0xff]   ;;  %844 = vmatprep.mubr.bf16.mxu1 %v881_v11  ;;  %756 = vst.msk [vmem:[%s1050_s4 + $0x28] sm:$0xff] %vm750_vm5, %v894_v45 }
   0x6   :  { %v886_v16 = vld [vmem:[%s1047_s0 + $0x38] sm:$0xff]   ;;  %vm968_vm2 = vmand %vm281_vm1, %vm280_vm0  ;;  %v313_v28 = vld [vmem:[%s1048_s2] sm:$0xff]  ;;  %757 = vst.msk [vmem:[%s1050_s4 + $0x30] sm:$0xff] %vm750_vm5, %v894_v45 }
   0x7   :  { %v787_v43 = vld [vmem:[%s1049_s3] ss:$0 sm:$0xff]  ;;  %758 = vst.msk [vmem:[%s1050_s4 + $0x38] sm:$0xff] %vm750_vm5, %v894_v45  ;;  %759 = vst.msk [vmem:[%s1050_s4 + $0x40] sm:$0xff] %vm750_vm5, %v894_v45 }
   0x8   :  { %760 = vst.msk [vmem:[%s1050_s4 + $0x48] sm:$0xff] %vm750_vm5, %v894_v45  ;;  %761 = vst.msk [vmem:[%s1050_s4 + $0x50] sm:$0xff] %vm750_vm5, %v894_v45 }
   0x9   :  { %762 = vst.msk [vmem:[%s1050_s4 + $0x58] sm:$0xff] %vm750_vm5, %v894_v45  ;;  %763 = vst.msk [vmem:[%s1050_s4 + $0x60] sm:$0xff] %vm750_vm5, %v894_v45 }
   0xa   :  { %764 = vst.msk [vmem:[%s1050_s4 + $0x68] sm:$0xff] %vm750_vm5, %v894_v45  ;;  %765 = vst.msk [vmem:[%s1050_s4 + $0x70] sm:$0xff] %vm750_vm5, %v894_v45 }
   0xb   :  { %823 = vmatpush3.bf16.xpose.msra.mxu0 %v872_v1  ;;  %861 = vmatpush3.bf16.xpose.msra.mxu1 %v872_v1  ;;  %766 = vst.msk [vmem:[%s1050_s4 + $0x78] sm:$0xff] %vm750_vm5, %v894_v45 }
   0xc   :  { %824 = vmatprep.subr.bf16.mxu0 %v873_v2  ;;  %854 = vmatprep.subr.bf16.mxu1 %v873_v2 }
  0x13   :  { %825 = vmatpush3.bf16.xpose.msra.mxu0 %v873_v2  ;;  %862 = vmatpush3.bf16.xpose.msra.mxu1 %v873_v2 }
  0x14   :  { %826 = vmatprep.subr.bf16.mxu0 %v874_v4  ;;  %855 = vmatprep.subr.bf16.mxu1 %v874_v4 }
  0x1b   :  { %827 = vmatpush3.bf16.xpose.msra.mxu0 %v874_v4  ;;  %863 = vmatpush3.bf16.xpose.msra.mxu1 %v874_v4 }
  0x1c   :  { %828 = vmatprep.subr.bf16.mxu0 %v875_v5  ;;  %856 = vmatprep.subr.bf16.mxu1 %v875_v5 }
  0x23   :  { %829 = vmatpush3.bf16.xpose.msra.mxu0 %v875_v5  ;;  %864 = vmatpush3.bf16.xpose.msra.mxu1 %v875_v5 }
  0x24   :  { %830 = vmatprep.subr.bf16.mxu0 %v876_v6  ;;  %857 = vmatprep.subr.bf16.mxu1 %v876_v6 }
  0x2b   :  { %831 = vmatpush3.bf16.xpose.msra.mxu0 %v876_v6  ;;  %865 = vmatpush3.bf16.xpose.msra.mxu1 %v876_v6 }
  0x2c   :  { %832 = vmatprep.subr.bf16.mxu0 %v877_v7  ;;  %858 = vmatprep.subr.bf16.mxu1 %v877_v7 }
  0x33   :  { %833 = vmatpush3.bf16.xpose.msra.mxu0 %v877_v7  ;;  %866 = vmatpush3.bf16.xpose.msra.mxu1 %v877_v7 }
  0x34   :  { %834 = vmatprep.subr.bf16.mxu0 %v878_v8  ;;  %859 = vmatprep.subr.bf16.mxu1 %v878_v8 }
  0x3b   :  { %835 = vmatpush3.bf16.xpose.msra.mxu0 %v878_v8  ;;  %867 = vmatpush3.bf16.xpose.msra.mxu1 %v878_v8 }
  0x42   :  { %837 = vmatmul.mubr.bf16.vlgmr.msra.gmra.mrb[0].mxu0 %v880_v9  ;;  %845 = vmatmul.mubr.bf16.vlgmr.msra.gmra.mrb[0].mxu1 %v882_v12 }
  0x43   :  { %840 = vmatprep.mubr.bf16.mxu0 %v883_v13  ;;  %848 = vmatprep.mubr.bf16.mxu1 %v884_v14 }
  0x4a   :  { %841 = vmatmul.mubr.bf16.gmra.mrb[4].mxu0 %v885_v15  ;;  %849 = vmatmul.mubr.bf16.gmra.mrb[4].mxu1 %v886_v16 }
 0x115   :  { %v838_v17 = vpop.f32.mrb[0].mxu0  ;;  %v846_v29 = vpop.f32.mrb[0].mxu1 }
 0x116   :  { %v180_v18 = vpop.f32.mrb[1].mxu0  ;;  %v212_v31 = vpop.f32.mrb[1].mxu1 }
 0x117   :  { %v414_v20 = vmul.f32 1.442695, %v180_v18  ;;  %v839_v21 = vpop.f32.mrb[2].mxu0  ;;  %v847_v33 = vpop.f32.mrb[2].mxu1 }
 0x118   :  { %v183_v22 = vpop.f32.mrb[3].mxu0  ;;  %v215_v35 = vpop.f32.mrb[3].mxu1 }
 0x119   :  { %887 = vpow2.f32 %v414_v20 }
 0x11d   :  { %v842_v30 = vpop.f32.mrb[4].mxu0  ;;  %v850_v37 = vpop.f32.mrb[4].mxu1 }
 0x11e   :  { %v196_v32 = vpop.f32.mrb[5].mxu0  ;;  %v228_v38 = vpop.f32.mrb[5].mxu1 }
 0x11f   :  { %v843_v34 = vpop.f32.mrb[6].mxu0  ;;  %v851_v39 = vpop.f32.mrb[6].mxu1 }
 0x120   :  { %v199_v36 = vpop.f32.mrb[7].mxu0  ;;  %v231_v40 = vpop.f32.mrb[7].mxu1 }
 0x123   :  { %v888_v26 = vpop.eup %887 }
 0x124   :  { %v446_v27 = vsel %vm968_vm2, %v888_v26, 0.0 }
 0x125   :  { %462 = vadd.xlane.f32.xlu0 %v446_v27 }
 0x13b   :  { %331 = vperm.xlu0 %870, %v313_v28  }
 0x1b2   :  { %v463_v41 = vpop.xlane.xlu0 %462 }
 0x1b3   :  { %v494_v42 = vadd.f32 1e-08, %v463_v41 }
 0x1b5   :  { %889 = vlog2.f32 %v494_v42 }
 0x1ba   :  { %v332_v44 = vpop.permute.xlu0 %331 }
 0x1bb   :  { %vm382_vm3 = vcmp.eq.s32.totalorder %v332_v44, %v787_v43 }
 0x1bc   :  { %vm398_vm4 = vmand %vm382_vm3, %vm968_vm2 }
 0x1bd   :  { %v788_v46 = vsel %vm398_vm4, 1.0, %v894_v45 }
 0x1be   :  { %638 = vadd.xlane.f32.xlu1 %v788_v46 }
 0x1bf   :  { %v890_v47 = vpop.eup %889 }
 0x1c0   :  { %v511_v48 = vmul.f32 0.6931472, %v890_v47 }
 0x1c2   :  { %v542_v49 = vsub.f32 %v180_v18, %v511_v48 }
 0x1c4   :  { %v590_v50 = vmul.f32 %v788_v46, %v542_v49 }
 0x1c6   :  { %606 = vadd.xlane.f32.xlu1 %v590_v50 }
 0x24b   :  { %v639_v51 = vpop.xlane.xlu1 %638 }
 0x24c   :  { %v670_v52 = vmax.f32 %v639_v51, 1.0 }
 0x24e   :  { %891 = vrcp.f32 %v670_v52 }
 0x253   :  { %v607_v54 = vpop.xlane.xlu1 %606 }
 0x258   :  { %v892_v53 = vpop.eup %891 }
 0x259   :  { %v687_v55 = vmul.f32 %v892_v53, %v607_v54 }
 0x25b   :  { %751 = vst.msk [vmem:[%s1050_s4] sm:$0xff] %vm750_vm5, %v687_v55 }

</bundles_post_ra>
